<compile_context>
chip_gen: v6e
topology: v6e:2x2x1
jax: 0.10.0
libtpu: 0.0.40
codegen_flags: <defaults>
</compile_context>

<pallas_src>
import functools

import jax
import jax.numpy as jnp
from jax.experimental import pallas as pl
from jax.experimental.pallas import tpu as pltpu

IN_DIM = 20
OUT_DIM = 2
TILE_B_MAX = 2048  # per-step overhead ~0.35us; cap keeps VMEM bounded on v7x/v5e


def _round_up(n, m):
    return ((n + m - 1) // m) * m


def _softplus(z):
    # matches torch.nn.Softplus(beta=1, threshold=20)
    return jnp.where(z > 20.0, z, jnp.log1p(jnp.exp(jnp.minimum(z, 20.0))))


def mlp_kernel(x_ref,
               w1_ref, b1_ref,
               w2_ref, b2_ref,
               w3_ref, b3_ref,
               w4_ref, b4_ref,
               w5_ref, b5_ref,
               o_ref):
    def dense_relu(h_f32, w_ref, b_ref):
        # bf16 MXU matmul with f32 accumulation; bias add + ReLU stay f32 (VPU).
        z = jnp.dot(h_f32.astype(jnp.bfloat16), w_ref[...],
                    preferred_element_type=jnp.float32) + b_ref[...]
        return jnp.maximum(z, 0.0)

    h = jnp.maximum(x_ref[...], 0.0)       # F.relu(x.view(-1, 20))
    h = dense_relu(h, w1_ref, b1_ref)      # fc1 + ReLU
    h = dense_relu(h, w2_ref, b2_ref)      # fc2 + ReLU
    h = dense_relu(h, w3_ref, b3_ref)      # fc3 + ReLU
    h = dense_relu(h, w4_ref, b4_ref)      # fc4 + ReLU

    # fc5 (80 -> 2) off the MXU: broadcast-multiply + cross-lane reduce per output
    # column (VPU + XLU), all in f32.  w5 is kept as (2, 80) f32, b5 as (1, 2) f32.
    w5 = w5_ref[...]                                                   # (2, 80)
    z0 = jnp.sum(h * w5[0:1, :], axis=-1, keepdims=True) + b5_ref[:, 0:1]
    z1 = jnp.sum(h * w5[1:2, :], axis=-1, keepdims=True) + b5_ref[:, 1:2]
    o_ref[:, 0:1] = _softplus(z0)
    o_ref[:, 1:2] = _softplus(z1)


def pack_params(params):
    """One-time packing.

    fc1..fc4: (out,in) f32 -> (in,out) bf16 weights for the MXU.
    fc5     : kept (out,in)=(2,80) f32 (runs on VPU/XLU, not MXU).
    Biases  : (1,out) f32 rows.
    """
    packed = []
    last = len(params) - 1
    for idx, (w, b) in enumerate(params):
        w = jnp.asarray(w, jnp.float32)
        if idx == last:
            packed.append(w)                              # (2, 80) f32
        else:
            packed.append(w.T.astype(jnp.bfloat16))       # (in, out) bf16
        packed.append(jnp.asarray(b, jnp.float32).reshape(1, -1))
    return tuple(packed)


@functools.partial(jax.jit, static_argnames=("tile_b",))
def _forward_padded(x2d, packed, tile_b):
    b_pad = x2d.shape[0]
    grid = (b_pad // tile_b,)

    # Weights/biases: full-array blocks, constant index_map -> VMEM-resident
    # (Pallas does not re-DMA a block whose index is unchanged across steps).
    param_specs = [pl.BlockSpec(p.shape, lambda i: (0, 0)) for p in packed]
    in_specs = [pl.BlockSpec((tile_b, IN_DIM), lambda i: (i, 0))] + param_specs
    out_specs = pl.BlockSpec((tile_b, OUT_DIM), lambda i: (i, 0))

    return pl.pallas_call(
        mlp_kernel,
        out_shape=jax.ShapeDtypeStruct((b_pad, OUT_DIM), jnp.float32),
        grid=grid,
        in_specs=in_specs,
        out_specs=out_specs,
        compiler_params=pltpu.CompilerParams(
            # Batch axis shards across both TCs on v7x; no-op on v5e/v6e.
            dimension_semantics=("parallel",),
            # Explicit scoped-VMEM budget: safe on v7x (64 MiB physical) and
            # raises v5e's 16 MiB default; ample for tile_b <= 2048.
            vmem_limit_bytes=32 * 1024 * 1024,
        ),
    )(x2d, *packed)


def comparison_fc_large(x, packed_params, tile_b=None):
    """x: any shape whose total size is a multiple of 20 (views to (-1, 20))."""
    x2d = jnp.reshape(x, (-1, IN_DIM)).astype(jnp.float32)
    b = x2d.shape[0]
    if tile_b is None:
        # Target >= 2 grid steps so both v7x TensorCores get work.
        tile_b = min(TILE_B_MAX, max(8, _round_up(-(-b // 2), 8)))
    # Pad to an even number of grid steps (balanced megacore split on v7x).
    b_pad = _round_up(b, 2 * tile_b)
    if b_pad != b:
        x2d = jnp.pad(x2d, ((0, b_pad - b), (0, 0)))
    out = _forward_padded(x2d, packed_params, tile_b)
    return out[:b]


# ----------------------------------------------------------------------------
# init / reference (pure JAX, f32)
# ----------------------------------------------------------------------------
def init_linear_params(key, in_f, out_f):
    # Mimics nn.Linear default init: uniform +/- 1/sqrt(fan_in), weight (out, in).
    kw, kb = jax.random.split(key)
    bound = 1.0 / jnp.sqrt(jnp.float32(in_f))
    w = jax.random.uniform(kw, (out_f, in_f), jnp.float32, -bound, bound)
    b = jax.random.uniform(kb, (out_f,), jnp.float32, -bound, bound)
    return w, b


def init_params(key):
    dims = [(20, 40), (40, 80), (80, 160), (160, 80), (80, 2)]
    keys = jax.random.split(key, len(dims))
    return [init_linear_params(k, i, o) for k, (i, o) in zip(keys, dims)]


def reference_forward(x, params):
    h = jnp.maximum(jnp.reshape(x, (-1, IN_DIM)), 0.0)
    for i, (w, b) in enumerate(params):
        h = h @ w.T + b
        h = jnp.maximum(h, 0.0) if i < len(params) - 1 else _softplus(h)
    return h


if __name__ == "__main__":
    key = jax.random.PRNGKey(0)
    kx, kx2, kp = jax.random.split(key, 3)

    params = init_params(kp)
    packed = pack_params(params)   # one-time packing (transpose + bf16 + bias rows)

    # Small input consistent with the module: views to (-1, 20).
    x = jax.random.normal(kx, (2, 4, 20), jnp.float32)   # -> (8, 20) after view
    out = jax.block_until_ready(comparison_fc_large(x, packed))
    ref = reference_forward(x, params)
    assert out.shape == (8, 2), out.shape
    # bf16 MXU matmuls (fc1-fc4) with f32 accumulation -> relaxed tolerance.
    assert jnp.allclose(out, ref, atol=5e-2, rtol=5e-2), (
        "mismatch vs reference: max abs err "
        f"{jnp.max(jnp.abs(out - ref))}")

    # Second check: ragged batch + multi-tile grid (exercises padding & pipelining).
    x2 = jax.random.normal(kx2, (200, 20), jnp.float32)
    out2 = jax.block_until_ready(comparison_fc_large(x2, packed, tile_b=64))
    ref2 = reference_forward(x2, params)
    assert out2.shape == (200, 2), out2.shape
    assert jnp.allclose(out2, ref2, atol=5e-2, rtol=5e-2), (
        "mismatch vs reference (gridded): max abs err "
        f"{jnp.max(jnp.abs(out2 - ref2))}")

    print("KERNEL_OK")
</pallas_src>

<mosaic_0001>
module attributes {stable_mosaic.version = 11 : i64} {
  func.func @mlp_kernel(%arg0: i32, %arg1: memref<8x20xf32, #tpu.memory_space<vmem>>, %arg2: memref<20x40xbf16, #tpu.memory_space<vmem>>, %arg3: memref<1x40xf32, #tpu.memory_space<vmem>>, %arg4: memref<40x80xbf16, #tpu.memory_space<vmem>>, %arg5: memref<1x80xf32, #tpu.memory_space<vmem>>, %arg6: memref<80x160xbf16, #tpu.memory_space<vmem>>, %arg7: memref<1x160xf32, #tpu.memory_space<vmem>>, %arg8: memref<160x80xbf16, #tpu.memory_space<vmem>>, %arg9: memref<1x80xf32, #tpu.memory_space<vmem>>, %arg10: memref<2x80xf32, #tpu.memory_space<vmem>>, %arg11: memref<1x2xf32, #tpu.memory_space<vmem>>, %arg12: memref<8x2xf32, #tpu.memory_space<vmem>>) attributes {dimension_semantics = [#tpu.dimension_semantics<parallel>], iteration_bounds = array<i64: 2>, scalar_prefetch = 0 : i64, scratch_operands = 0 : i64, tpu.core_type = #tpu.core_type<tc>, window_params = [{transform_indices = @transform_0, window_bounds = array<i64: 8, 20>}, {pipeline_mode = #tpu.pipeline_mode<synchronous>, transform_indices = @transform_1, window_bounds = array<i64: 20, 40>}, {pipeline_mode = #tpu.pipeline_mode<synchronous>, transform_indices = @transform_2, window_bounds = array<i64: 1, 40>}, {pipeline_mode = #tpu.pipeline_mode<synchronous>, transform_indices = @transform_3, window_bounds = array<i64: 40, 80>}, {pipeline_mode = #tpu.pipeline_mode<synchronous>, transform_indices = @transform_4, window_bounds = array<i64: 1, 80>}, {pipeline_mode = #tpu.pipeline_mode<synchronous>, transform_indices = @transform_5, window_bounds = array<i64: 80, 160>}, {pipeline_mode = #tpu.pipeline_mode<synchronous>, transform_indices = @transform_6, window_bounds = array<i64: 1, 160>}, {pipeline_mode = #tpu.pipeline_mode<synchronous>, transform_indices = @transform_7, window_bounds = array<i64: 160, 80>}, {pipeline_mode = #tpu.pipeline_mode<synchronous>, transform_indices = @transform_8, window_bounds = array<i64: 1, 80>}, {pipeline_mode = #tpu.pipeline_mode<synchronous>, transform_indices = @transform_9, window_bounds = array<i64: 2, 80>}, {pipeline_mode = #tpu.pipeline_mode<synchronous>, transform_indices = @transform_10, window_bounds = array<i64: 1, 2>}, {transform_indices = @transform_11, window_bounds = array<i64: 8, 2>}]} {
    %c0 = arith.constant 0 : index
    %c0_0 = arith.constant 0 : index
    %0 = vector.load %arg1[%c0, %c0_0] : memref<8x20xf32, #tpu.memory_space<vmem>>, vector<8x20xf32>
    %cst = arith.constant 0.000000e+00 : f32
    %1 = vector.broadcast %cst : f32 to vector<8x20xf32>
    %2 = arith.maximumf %0, %1 : vector<8x20xf32>
    %3 = arith.truncf %2 : vector<8x20xf32> to vector<8x20xbf16>
    %c0_1 = arith.constant 0 : index
    %c0_2 = arith.constant 0 : index
    %4 = vector.load %arg2[%c0_1, %c0_2] : memref<20x40xbf16, #tpu.memory_space<vmem>>, vector<20x40xbf16>
    %cst_3 = arith.constant dense<0.000000e+00> : vector<8x40xf32>
    %5 = tpu.matmul %3, %4, %cst_3 {dimension_numbers = #tpu.dot_dimension_numbers<[1], [0], [0], [1], [0, 0, 1, 1], [], []>} : vector<8x20xbf16>, vector<20x40xbf16>, vector<8x40xf32> -> vector<8x40xf32>
    %c0_4 = arith.constant 0 : index
    %c0_5 = arith.constant 0 : index
    %6 = vector.load %arg3[%c0_4, %c0_5] : memref<1x40xf32, #tpu.memory_space<vmem>>, vector<1x40xf32>
    %7 = vector.broadcast %6 : vector<1x40xf32> to vector<8x40xf32>
    %8 = arith.addf %5, %7 : vector<8x40xf32>
    %cst_6 = arith.constant 0.000000e+00 : f32
    %9 = vector.broadcast %cst_6 : f32 to vector<8x40xf32>
    %10 = arith.maximumf %8, %9 : vector<8x40xf32>
    %11 = arith.truncf %10 : vector<8x40xf32> to vector<8x40xbf16>
    %c0_7 = arith.constant 0 : index
    %c0_8 = arith.constant 0 : index
    %12 = vector.load %arg4[%c0_7, %c0_8] : memref<40x80xbf16, #tpu.memory_space<vmem>>, vector<40x80xbf16>
    %cst_9 = arith.constant dense<0.000000e+00> : vector<8x80xf32>
    %13 = tpu.matmul %11, %12, %cst_9 {dimension_numbers = #tpu.dot_dimension_numbers<[1], [0], [0], [1], [0, 0, 1, 1], [], []>} : vector<8x40xbf16>, vector<40x80xbf16>, vector<8x80xf32> -> vector<8x80xf32>
    %c0_10 = arith.constant 0 : index
    %c0_11 = arith.constant 0 : index
    %14 = vector.load %arg5[%c0_10, %c0_11] : memref<1x80xf32, #tpu.memory_space<vmem>>, vector<1x80xf32>
    %15 = vector.broadcast %14 : vector<1x80xf32> to vector<8x80xf32>
    %16 = arith.addf %13, %15 : vector<8x80xf32>
    %cst_12 = arith.constant 0.000000e+00 : f32
    %17 = vector.broadcast %cst_12 : f32 to vector<8x80xf32>
    %18 = arith.maximumf %16, %17 : vector<8x80xf32>
    %19 = arith.truncf %18 : vector<8x80xf32> to vector<8x80xbf16>
    %c0_13 = arith.constant 0 : index
    %c0_14 = arith.constant 0 : index
    %20 = vector.load %arg6[%c0_13, %c0_14] : memref<80x160xbf16, #tpu.memory_space<vmem>>, vector<80x160xbf16>
    %cst_15 = arith.constant dense<0.000000e+00> : vector<8x160xf32>
    %21 = tpu.matmul %19, %20, %cst_15 {dimension_numbers = #tpu.dot_dimension_numbers<[1], [0], [0], [1], [0, 0, 1, 1], [], []>} : vector<8x80xbf16>, vector<80x160xbf16>, vector<8x160xf32> -> vector<8x160xf32>
    %c0_16 = arith.constant 0 : index
    %c0_17 = arith.constant 0 : index
    %22 = vector.load %arg7[%c0_16, %c0_17] : memref<1x160xf32, #tpu.memory_space<vmem>>, vector<1x160xf32>
    %23 = vector.broadcast %22 : vector<1x160xf32> to vector<8x160xf32>
    %24 = arith.addf %21, %23 : vector<8x160xf32>
    %cst_18 = arith.constant 0.000000e+00 : f32
    %25 = vector.broadcast %cst_18 : f32 to vector<8x160xf32>
    %26 = arith.maximumf %24, %25 : vector<8x160xf32>
    %27 = arith.truncf %26 : vector<8x160xf32> to vector<8x160xbf16>
    %c0_19 = arith.constant 0 : index
    %c0_20 = arith.constant 0 : index
    %28 = vector.load %arg8[%c0_19, %c0_20] : memref<160x80xbf16, #tpu.memory_space<vmem>>, vector<160x80xbf16>
    %cst_21 = arith.constant dense<0.000000e+00> : vector<8x80xf32>
    %29 = tpu.matmul %27, %28, %cst_21 {dimension_numbers = #tpu.dot_dimension_numbers<[1], [0], [0], [1], [0, 0, 1, 1], [], []>} : vector<8x160xbf16>, vector<160x80xbf16>, vector<8x80xf32> -> vector<8x80xf32>
    %c0_22 = arith.constant 0 : index
    %c0_23 = arith.constant 0 : index
    %30 = vector.load %arg9[%c0_22, %c0_23] : memref<1x80xf32, #tpu.memory_space<vmem>>, vector<1x80xf32>
    %31 = vector.broadcast %30 : vector<1x80xf32> to vector<8x80xf32>
    %32 = arith.addf %29, %31 : vector<8x80xf32>
    %cst_24 = arith.constant 0.000000e+00 : f32
    %33 = vector.broadcast %cst_24 : f32 to vector<8x80xf32>
    %34 = arith.maximumf %32, %33 : vector<8x80xf32>
    %c0_25 = arith.constant 0 : index
    %c0_26 = arith.constant 0 : index
    %35 = vector.load %arg10[%c0_25, %c0_26] : memref<2x80xf32, #tpu.memory_space<vmem>>, vector<2x80xf32>
    %36 = vector.extract_strided_slice %35 {offsets = [0, 0], sizes = [1, 80], strides = [1, 1]} : vector<2x80xf32> to vector<1x80xf32>
    %37 = vector.broadcast %36 : vector<1x80xf32> to vector<8x80xf32>
    %38 = arith.mulf %34, %37 : vector<8x80xf32>
    %cst_27 = arith.constant dense<0.000000e+00> : vector<8xf32>
    %39 = vector.multi_reduction <add>, %38, %cst_27 [1] : vector<8x80xf32> to vector<8xf32>
    %40 = vector.shape_cast %39 : vector<8xf32> to vector<8x1xf32>
    %c0_28 = arith.constant 0 : index
    %c0_29 = arith.constant 0 : index
    %41 = vector.load %arg11[%c0_28, %c0_29] : memref<1x2xf32, #tpu.memory_space<vmem>>, vector<1x1xf32>
    %42 = vector.broadcast %41 : vector<1x1xf32> to vector<8x1xf32>
    %43 = arith.addf %40, %42 : vector<8x1xf32>
    %44 = vector.extract_strided_slice %35 {offsets = [1, 0], sizes = [1, 80], strides = [1, 1]} : vector<2x80xf32> to vector<1x80xf32>
    %45 = vector.broadcast %44 : vector<1x80xf32> to vector<8x80xf32>
    %46 = arith.mulf %34, %45 : vector<8x80xf32>
    %cst_30 = arith.constant dense<0.000000e+00> : vector<8xf32>
    %47 = vector.multi_reduction <add>, %46, %cst_30 [1] : vector<8x80xf32> to vector<8xf32>
    %48 = vector.shape_cast %47 : vector<8xf32> to vector<8x1xf32>
    %c0_31 = arith.constant 0 : index
    %c1 = arith.constant 1 : index
    %49 = vector.load %arg11[%c0_31, %c1] : memref<1x2xf32, #tpu.memory_space<vmem>>, vector<1x1xf32>
    %50 = vector.broadcast %49 : vector<1x1xf32> to vector<8x1xf32>
    %51 = arith.addf %48, %50 : vector<8x1xf32>
    %cst_32 = arith.constant 2.000000e+01 : f32
    %52 = vector.broadcast %cst_32 : f32 to vector<8x1xf32>
    %53 = arith.cmpf ogt, %43, %52 : vector<8x1xf32>
    %cst_33 = arith.constant 2.000000e+01 : f32
    %54 = vector.broadcast %cst_33 : f32 to vector<8x1xf32>
    %55 = arith.minimumf %43, %54 : vector<8x1xf32>
    %56 = math.exp %55 : vector<8x1xf32>
    %57 = math.log1p %56 : vector<8x1xf32>
    %58 = arith.select %53, %43, %57 : vector<8x1xi1>, vector<8x1xf32>
    %c0_34 = arith.constant 0 : index
    %c0_35 = arith.constant 0 : index
    %59 = vector.load %arg12[%c0_34, %c0_35] : memref<8x2xf32, #tpu.memory_space<vmem>>, vector<8x1xf32>
    tpu.vector_store %arg12[%c0_34, %c0_35], %58 {strides = array<i32>} : memref<8x2xf32, #tpu.memory_space<vmem>>, vector<8x1xf32>,
    %cst_36 = arith.constant 2.000000e+01 : f32
    %60 = vector.broadcast %cst_36 : f32 to vector<8x1xf32>
    %61 = arith.cmpf ogt, %51, %60 : vector<8x1xf32>
    %cst_37 = arith.constant 2.000000e+01 : f32
    %62 = vector.broadcast %cst_37 : f32 to vector<8x1xf32>
    %63 = arith.minimumf %51, %62 : vector<8x1xf32>
    %64 = math.exp %63 : vector<8x1xf32>
    %65 = math.log1p %64 : vector<8x1xf32>
    %66 = arith.select %61, %51, %65 : vector<8x1xi1>, vector<8x1xf32>
    %c0_38 = arith.constant 0 : index
    %c1_39 = arith.constant 1 : index
    %67 = vector.load %arg12[%c0_38, %c1_39] : memref<8x2xf32, #tpu.memory_space<vmem>>, vector<8x1xf32>
    tpu.vector_store %arg12[%c0_38, %c1_39], %66 {strides = array<i32>} : memref<8x2xf32, #tpu.memory_space<vmem>>, vector<8x1xf32>,
    return
  }
  func.func @transform_0(%arg0: i32) -> (i32, i32) {
    %c0_i32 = arith.constant 0 : i32
    %c0_i32_0 = arith.constant 0 : i32
    return %arg0, %c0_i32 : i32, i32
  }
  func.func @transform_1(%arg0: i32) -> (i32, i32) {
    %c0_i32 = arith.constant 0 : i32
    %c0_i32_0 = arith.constant 0 : i32
    %c0_i32_1 = arith.constant 0 : i32
    return %c0_i32, %c0_i32_0 : i32, i32
  }
  func.func @transform_2(%arg0: i32) -> (i32, i32) {
    %c0_i32 = arith.constant 0 : i32
    %c0_i32_0 = arith.constant 0 : i32
    %c0_i32_1 = arith.constant 0 : i32
    return %c0_i32, %c0_i32_0 : i32, i32
  }
  func.func @transform_3(%arg0: i32) -> (i32, i32) {
    %c0_i32 = arith.constant 0 : i32
    %c0_i32_0 = arith.constant 0 : i32
    %c0_i32_1 = arith.constant 0 : i32
    return %c0_i32, %c0_i32_0 : i32, i32
  }
  func.func @transform_4(%arg0: i32) -> (i32, i32) {
    %c0_i32 = arith.constant 0 : i32
    %c0_i32_0 = arith.constant 0 : i32
    %c0_i32_1 = arith.constant 0 : i32
    return %c0_i32, %c0_i32_0 : i32, i32
  }
  func.func @transform_5(%arg0: i32) -> (i32, i32) {
    %c0_i32 = arith.constant 0 : i32
    %c0_i32_0 = arith.constant 0 : i32
    %c0_i32_1 = arith.constant 0 : i32
    return %c0_i32, %c0_i32_0 : i32, i32
  }
  func.func @transform_6(%arg0: i32) -> (i32, i32) {
    %c0_i32 = arith.constant 0 : i32
    %c0_i32_0 = arith.constant 0 : i32
    %c0_i32_1 = arith.constant 0 : i32
    return %c0_i32, %c0_i32_0 : i32, i32
  }
  func.func @transform_7(%arg0: i32) -> (i32, i32) {
    %c0_i32 = arith.constant 0 : i32
    %c0_i32_0 = arith.constant 0 : i32
    %c0_i32_1 = arith.constant 0 : i32
    return %c0_i32, %c0_i32_0 : i32, i32
  }
  func.func @transform_8(%arg0: i32) -> (i32, i32) {
    %c0_i32 = arith.constant 0 : i32
    %c0_i32_0 = arith.constant 0 : i32
    %c0_i32_1 = arith.constant 0 : i32
    return %c0_i32, %c0_i32_0 : i32, i32
  }
  func.func @transform_9(%arg0: i32) -> (i32, i32) {
    %c0_i32 = arith.constant 0 : i32
    %c0_i32_0 = arith.constant 0 : i32
    %c0_i32_1 = arith.constant 0 : i32
    return %c0_i32, %c0_i32_0 : i32, i32
  }
  func.func @transform_10(%arg0: i32) -> (i32, i32) {
    %c0_i32 = arith.constant 0 : i32
    %c0_i32_0 = arith.constant 0 : i32
    %c0_i32_1 = arith.constant 0 : i32
    return %c0_i32, %c0_i32_0 : i32, i32
  }
  func.func @transform_11(%arg0: i32) -> (i32, i32) {
    %c0_i32 = arith.constant 0 : i32
    %c0_i32_0 = arith.constant 0 : i32
    return %arg0, %c0_i32 : i32, i32
  }
}

</mosaic_0001>

<bundles_post_ra>
// kernel: _forward_padded.1
= control target key start
LH: loop header
LB: loop body
LE: loop exit
PB: predicated region body
PF: predicated region fallthrough
CT: control target
= control target key end

     0   :  { %s1666_s0 = inlined_call_operand.hbm [shape: f32[16,20], index: 0, kind: input, shape index: {}]   ;;  %s1667_s1 = inlined_call_operand.hbm [shape: bf16[20,40], index: 1, kind: input, shape index: {}]   ;;  %s1668_s2 = inlined_call_operand.vmem [shape: f32[1,40], index: 2, kind: input, shape index: {}]   ;;  %s1669_s3 = inlined_call_operand.hbm [shape: bf16[40,80], index: 3, kind: input, shape index: {}]   ;;  %s1670_s4 = inlined_call_operand.vmem [shape: f32[1,80], index: 4, kind: input, shape index: {}]   ;;  %s1671_s5 = inlined_call_operand.hbm [shape: bf16[80,160], index: 5, kind: input, shape index: {}]   ;;  %s1672_s6 = inlined_call_operand.vmem [shape: f32[1,160], index: 6, kind: input, shape index: {}]   ;;  %s1673_s7 = inlined_call_operand.hbm [shape: bf16[160,80], index: 7, kind: input, shape index: {}]   ;;  %s1674_s8 = inlined_call_operand.vmem [shape: f32[1,80], index: 8, kind: input, shape index: {}]   ;;  %s1675_s9 = inlined_call_operand.vmem [shape: f32[2,80], index: 9, kind: input, shape index: {}]   ;;  %s1676_s10 = inlined_call_operand.vmem [shape: f32[1,2], index: 10, kind: input, shape index: {}]   ;;  %s1677_s11 = inlined_call_operand.vmem [shape: f32[16,2], index: 11, kind: output, shape index: {}]  }
   0x1   :  { %1681 = sst [smem:[#allocation13_spill]] %s1667_s1 }
   0x2   :  { %1682 = sst [smem:[#allocation14_spill]] %s1669_s3 }
   0x3   :  { %16 = vsyncpa [#allocation3], 0 }
   0x4   :  { %18 = vsyncpa [#allocation3 + $0x1], 0 }
   0x5   :  { %19 = vsyncpa [#allocation5], 0 }
   0x6   :  { %20 = vsyncpa [#allocation8], 0  ;;  %s1473_s17 = smov 0   ;;  %s1475_s18 = smov 0  }
   0x7   :  { %s1477_s19 = smov 0   ;;  %s1479_s20 = smov 0  }
   0x8 LB: > { %s1401_s21 = smov [#allocation4]   ;;  %s1494_s23 = sadd.s32 4294967295, %s1399_s20   ;;  %s1399_s20 = sphi %s1479_s20, %s1698_s20   ;;  %s1395_s19 = sphi %s1477_s19, %s1697_s19   ;;  %s1391_s18 = sphi %s1475_s18, %s1696_s18   ;;  %s1387_s17 = sphi %s1473_s17, %s1695_s17  }
   0x9   : > { %s305_s22 = sshll.u32 %s1401_s21, 4  ;;  %p1025_p0 = scmp.ge.s32.totalorder %s1399_s20, 1  ;;  %s306_s22 = int_to_ptr.vmem [resolvable:$true] %s305_s22 }
   0xa   : > { %p1678_p1 = scmp.eq.s32.totalorder %s1494_s23, 0  ;;  %p293_p2 = scmp.lt.s32.totalorder %s1399_s20, 3 }
   0xb   : > { %s1402_s25 = smov [#allocation7]   ;;  %s1403_s28 = smov [#allocation6]  }
   0xc   : > { %p1499_p3 = pnand %p1025_p0, %p293_p2  ;;  %s337_s26 = sshll.u32 %s1402_s25, 4  ;;  %s1511_s26 = int_to_ptr.vmem [resolvable:$true] %s337_s26 }
   0xd   : > { %s1513_s29 = sshll.u32 %s1403_s28, 4  ;;  %s1236_s30 = scalar_lea.vmem %s306_s22, 192  ;;  %s322_s29 = int_to_ptr.vmem [resolvable:$true] %s1513_s29 }
   0xe   : > { %s1683_s24 = scalar_select %p1499_p3, 1, 0 }
   0xf   : > { %p1118_p4 = pneg %p1499_p3  ;;  %p1237_p7 = scmp.ne.s32.totalorder %s306_s22, %s1236_s30 }
  0x10   : > { %p1244_p10 = scmp.lt.s32.totalorder %s306_s22, %s306_s22  ;;  %p1245_p11 = scmp.lt.s32.totalorder %s1236_s30, %s1236_s30 }
  0x11   : > { %p1507_p5 = pnand %p1118_p4, %p1678_p1 }
  0x12   : > { %p1246_p12 = por %p1245_p11, %p1244_p10 }
  0x13   : > { %p1227_p6 = pneg %p1507_p5 }
  0x15   : > { %p1239_p8 = pnand %p1237_p7, %p1227_p6 }
  0x17   : > { %p1240_p9 = pneg %p1239_p8 }
  0x19   : > { %p1247_p13 = pnand %p1246_p12, %p1240_p9 }
  0x1b   : > { %1250 = shalt.err (!%p1247_p13)
}
  0x1c   : > { %s1404_s12 = smov 64   ;;  %s1405_s13 = smov 4  }
  0x1d   : > { %s1685_s1 = sld [smem:[#allocation13_spill]]  ;;  %s1262_s16 = scalar_lea.vmem %s1511_s26, 1280 }
  0x1e   : > { %p1263_p0 = scmp.ne.s32.totalorder %s1511_s26, %s1262_s16  ;;  %p1270_p7 = scmp.lt.s32.totalorder %s1511_s26, %s1511_s26 }
  0x1f   : > { %p1271_p8 = scmp.lt.s32.totalorder %s1262_s16, %s1262_s16 }
  0x20   : > { %p1265_p2 = pnand %p1263_p0, %p1227_p6 }
  0x21   : > { %p1272_p9 = por %p1271_p8, %p1270_p7 }
  0x22   : > { %p1266_p4 = pneg %p1265_p2 }
  0x23   : > { %1121 = dma.hbm_to_vmem [thread:$0]  (!%p1507_p5), %s1685_s1, 192, %s306_s22, [#allocation5], %s1404_s12, %s1404_s12, %s1405_s13  }
  0x24   : > { %p1273_p10 = pnand %p1272_p9, %p1266_p4 }
  0x26   : > { %1276 = shalt.err (!%p1273_p10)
}
  0x27   : > { %s1406_s21 = smov 128   ;;  %s1407_s25 = smov 8  }
  0x28   : > { %1127 = dma.hbm_to_vmem [thread:$0]  (!%p1507_p5), %s1671_s5, 1280, %s1511_s26, [#allocation8], %s1406_s21, %s1406_s21, %s1407_s25  }
  0x29   : > { %s1288_s30 = scalar_lea.vmem %s322_s29, 320  ;;  %p1296_p0 = scmp.lt.s32.totalorder %s322_s29, %s322_s29 }
  0x2a   : > { %p1289_p11 = scmp.ne.s32.totalorder %s322_s29, %s1288_s30  ;;  %p1297_p2 = scmp.lt.s32.totalorder %s1288_s30, %s1288_s30 }
  0x2c   : > { %p1291_p12 = pnand %p1289_p11, %p1227_p6  ;;  %p1298_p4 = por %p1297_p2, %p1296_p0 }
  0x2e   : > { %p1292_p13 = pneg %p1291_p12 }
  0x30   : > { %p1299_p7 = pnand %p1298_p4, %p1292_p13 }
  0x32   : > { %1302 = shalt.err (!%p1299_p7)
}
  0x33   : > { %s1686_s3 = sld [smem:[#allocation14_spill]]  ;;  %s1408_s26 = smov [#allocation9]  }
  0x34   : > { %s353_s16 = sshll.u32 %s1408_s26, 4  ;;  %s354_s16 = int_to_ptr.vmem [resolvable:$true] %s353_s16 }
  0x35   : > { %s1314_s21 = scalar_lea.vmem %s354_s16, 1280  ;;  %p1322_p11 = scmp.lt.s32.totalorder %s354_s16, %s354_s16 }
  0x36   : > { %p1315_p8 = scmp.ne.s32.totalorder %s354_s16, %s1314_s21  ;;  %p1323_p12 = scmp.lt.s32.totalorder %s1314_s21, %s1314_s21 }
  0x38   : > { %p1317_p9 = pnand %p1315_p8, %p1227_p6  ;;  %p1324_p13 = por %p1323_p12, %p1322_p11 }
  0x39   : > { %1124 = dma.hbm_to_vmem [thread:$0]  (!%p1507_p5), %s1686_s3, 320, %s322_s29, [#allocation5], %s1404_s12, %s1404_s12, %s1405_s13  }
  0x3a   : > { %p1318_p10 = pneg %p1317_p9 }
  0x3c   : > { %p1325_p0 = pnand %p1324_p13, %p1318_p10 }
  0x3e   : > { %1328 = shalt.err (!%p1325_p0)
}
  0x3f   : > { %1130 = dma.hbm_to_vmem [thread:$0]  (!%p1507_p5), %s1673_s7, 1280, %s354_s16, [#allocation8], %s1404_s12, %s1404_s12, %s1405_s13  }
  0x40   : > { %s1565_s27 = sadd.s32 1, %s1399_s20   ;;  %s33_s22 = sadd.s32 1, %s1395_s19 }
  0x41   : > { %s30_s28 = ssub.s32 %s1399_s20, %s1565_s27  ;;  %p40_p6 = scmp.ne.s32.totalorder %s1395_s19, %s1391_s18 }
  0x42   : > { %p31_p2 = scmp.eq.s32.totalorder %s30_s28, 0  ;;  %p41_p4 = scmp.eq.s32.totalorder %s1399_s20, 0 }
  0x43   : > { %p46_p7 = scmp.ne.s32.totalorder %s1391_s18, %s1387_s17  ;;  %p1139_p8 = scmp.lt.s32.totalorder %s1399_s20, 2 }
  0x44   : > { %s1577_s30 = scalar_select %p31_p2, %s1395_s19, %s33_s22  }
  0x45   : > { %p42_p9 = por %p41_p4, %p40_p6  ;;  %p1581_p10 = por %p1678_p1, %p46_p7 }
  0x46   : > { %s376_s15 = sand.u32 1, %s1395_s19   ;;  %s1032_s12 = sshll.u32 %s1399_s20, 7 }
  0x47   : > { %s1687_s14 = scalar_select %p1581_p10, 1, 0 }
  0x48   : > { %s1031_s13 = sshll.u32 %s376_s15, 3  ;;  %s1590_s21 = scalar_lea.hbm %s1666_s0, %s1032_s12 }
  0x49   : > { %s380_s17 = scalar_lea.vmem [#allocation2], %s1031_s13  ;;  %p1592_p5 = pnand %p1139_p8, %p42_p9 }
  0x4a   : > { %s387_s29 = sshll.u32 %s380_s17, 4  ;;  %s377_s22 = scalar_lea.sflag [#allocation3], %s376_s15  ;;  %s388_s29 = int_to_ptr.vmem [resolvable:$true] %s387_s29 }
  0x4b   : > { %s1329_s28 = scalar_lea.hbm %s1590_s21, 128  ;;  %p1331_p12 = pneg %p1592_p5 }
  0x4c   : > { %p1330_p11 = scmp.ne.s32.totalorder %s1590_s21, %s1329_s28  ;;  %s1334_s26 = scalar_lea.hbm %s1666_s0, 256 }
  0x4d   : > { %p1335_p6 = scmp.lt.s32.totalorder %s1590_s21, %s1666_s0  ;;  %p1336_p2 = scmp.lt.s32.totalorder %s1334_s26, %s1329_s28 }
  0x4e   : > { %p1332_p13 = pnand %p1331_p12, %p1330_p11 }
  0x4f   : > { %p1337_p4 = por %p1336_p2, %p1335_p6 }
  0x50   : > { %p1333_p0 = pneg %p1332_p13 }
  0x52   : > { %p1338_p7 = pnand %p1337_p4, %p1333_p0 }
  0x54   : > { %1341 = shalt.err (!%p1338_p7)
}
  0x55   : > { %s1342_s17 = scalar_lea.vmem %s388_s29, 128  ;;  %s1409_s15 = smov [#allocation2]  }
  0x56   : > { %p1343_p8 = scmp.ne.s32.totalorder %s388_s29, %s1342_s17  ;;  %s1347_s1 = sshll.u32 %s1409_s15, 4  ;;  %s1348_s1 = int_to_ptr.vmem [resolvable:$false] %s1347_s1 }
  0x57   : > { %s1349_s3 = scalar_lea.vmem %s1348_s1, 256  ;;  %p1350_p11 = scmp.lt.s32.totalorder %s388_s29, %s1348_s1 }
  0x58   : > { %p1345_p9 = pnand %p1343_p8, %p1331_p12  ;;  %p1351_p13 = scmp.lt.s32.totalorder %s1349_s3, %s1342_s17 }
  0x5a   : > { %p1346_p1 = pneg %p1345_p9  ;;  %p1352_p10 = por %p1351_p13, %p1350_p11 }
  0x5c   : > { %p1353_p3 = pnand %p1352_p10, %p1346_p1 }
  0x5e   : > { %1356 = shalt.err (!%p1353_p3)
}
  0x5f   : > { %1134 = dma.hbm_to_vmem [thread:$0]  (!%p1592_p5), %s1590_s21, 128, %s388_s29, %s377_s22  }
  0x60   : > { %p1689_p0 = scmp.ne.s32.totalorder %s1683_s24, 0 }
  0x61   : > { %s398_s28 = sand.u32 (!%p1689_p0), 1, %s1391_s18   ;;  %p1690_p12 = scmp.ne.s32.totalorder (!%p1689_p0), %s1687_s14, 0 }
  0x62   : > { %396 = sbr.rel (%p1689_p0) target bundleno = 1102 (0x44e), region = 64  ;;  %s1034_s20 = sshll.u32 (!%p1689_p0), %s398_s28, 3 }
  0x63   : > { %s399_s12 = scalar_lea.sflag (!%p1689_p0), [#allocation3], %s398_s28  ;;  %s402_s26 = scalar_lea.vmem (!%p1689_p0), [#allocation2], %s1034_s20 }
  0x67   : > { %1374 = dma.done.wait (%p1690_p12), %s399_s12, 128  }
  0x68   : > { %1376 = vsyncadd (%p1690_p12), %s399_s12, 4294967168  ;;  %p1691_p1 = scmp.eq.s32.totalorder %s1494_s23, 0 }
  0x6a   : > { %1378 = dma.done.wait (%p1691_p1), [#allocation5], 512   ;;  %p1692_p3 = pmov %p1691_p1 }
  0x6b   : > { %p1693_p10 = pmov %p1691_p1 }
  0x6c   : > { %1380 = vsyncadd (%p1692_p3), [#allocation5], 4294966784 }
  0x6d   : > { %1382 = dma.done.wait (%p1693_p10), [#allocation8], 2560   ;;  %p1694_p5 = pmov %p1691_p1 }
  0x6e   : > { %v1410_v0 = vmov 0.0   ;;  %vm1411_vm0 = vmmov 0   ;;  %vm487_vm1 = vcmask 1041408   ;;  %v1187_v1 = vld [vmem:[#allocation4 + $0x8] ss:$0 sps:$4 sm:$0x33]   ;;  %v622_v48 = vlaneseq }
  0x6f   : > { %1384 = vsyncadd (%p1694_p5), [#allocation8], 4294964736  ;;  %1082 = vmatprep.subr.bf16.mxu0 %v1410_v0  ;;  %1086 = vmatprep.mubr.msk.bf16.mxu0 %vm1411_vm0, %v1410_v0  ;;  %v461_v2 = vld [vmem:[%s402_s26] sm:$0xff]  ;;  %v489_v3 = vsel %vm487_vm1, %v1187_v1, 0  ;;  %v1188_v4 = vld [vmem:[#allocation4] sm:$0xff]   ;;  %vm564_vm2 = vcmask 1043456  }
  0x70   : > { %v462_v5 = vmax.f32 %v461_v2, 0.0  ;;  %1083 = vmatpush3.bf16.msra.mxu0 %v489_v3  ;;  %v1189_v6 = vld [vmem:[#allocation6 + $0x10] ss:$0 sps:$4 sm:$0xff]   ;;  %vm483_vm3 = vcmask 162816   ;;  %v1190_v9 = vld [vmem:[#allocation6 + $0x8] sm:$0xff]   ;;  %v1191_v10 = vld [vmem:[#allocation6] sm:$0xff]  }
  0x71   : > { %1084 = vmatprep.subr.bf16.mxu0 %v1410_v0  ;;  %v566_v8 = vsel %vm564_vm2, %v1189_v6, 0  ;;  %v1194_v11 = vld [vmem:[#allocation7 + $0x44] ss:$8 sps:$4 sm:$0xff]   ;;  %v1040_v12 = vld [vmem:[%s1668_s2] ss:$0 sm:$0xff]  ;;  %vm560_vm4 = vcmask 326656  }
  0x72   : > { %v463_v7 = vpack.c.bf16 %v462_v5, %v462_v5  ;;  %v1192_v18 = vld [vmem:[#allocation7 + $0x40] ss:$8 sps:$4 sm:$0xff]   ;;  %v1197_v20 = vld [vmem:[#allocation7 + $0x34] ss:$8 sps:$4 sm:$0xff]   ;;  %v1195_v22 = vld [vmem:[#allocation7 + $0x30] ss:$8 sps:$4 sm:$0xff]  }
  0x73   : > { %v1200_v23 = vld [vmem:[#allocation7 + $0x24] ss:$8 sps:$4 sm:$0xff]   ;;  %v1198_v24 = vld [vmem:[#allocation7 + $0x20] ss:$8 sps:$4 sm:$0xff]   ;;  %v1203_v25 = vld [vmem:[#allocation7 + $0x14] ss:$8 sps:$4 sm:$0xff]  }
  0x74   : > { %1085 = vmatpush3.bf16.msra.mxu0 %v1188_v4  ;;  %v1201_v26 = vld [vmem:[#allocation7 + $0x10] ss:$8 sps:$4 sm:$0xff]   ;;  %v1206_v27 = vld [vmem:[#allocation7 + $0x4] ss:$8 sps:$4 sm:$0xff]   ;;  %v1204_v28 = vld [vmem:[#allocation7] ss:$8 sps:$4 sm:$0xff]  }
  0x75   : > { %1090 = vmatprep.subr.bf16.mxu0 %v1410_v0  ;;  %v1412_v29 = vmov 0   ;;  %v1207_v30 = vld [vmem:[#allocation9 + $0x38] sm:$0xff]   ;;  %v1208_v31 = vld [vmem:[#allocation9 + $0x30] sm:$0xff]   ;;  %v1209_v32 = vld [vmem:[#allocation9 + $0x28] sm:$0xff]   ;;  %vm682_vm5 = vcmask 654336   ;;  %v623_v49 = vshrl.u32 %v622_v48, 7 }
  0x76   : > { %822 = vmatprep.subr.bf16.mxu1 %v1412_v29  ;;  %v1210_v33 = vld [vmem:[#allocation9 + $0x20] sm:$0xff]   ;;  %v1211_v34 = vld [vmem:[#allocation9 + $0x18] sm:$0xff]   ;;  %v1212_v35 = vld [vmem:[#allocation9 + $0x10] sm:$0xff]   ;;  %vm818_vm6 = vcmask 261120   ;;  %p456_p6 = scmp.lt.s32.totalorder %s1494_s23, 1  ;;  %vm903_vm7 = vcmask 7168  }
  0x77   : > { %1087 = vmatmul.mubr.msk.bf16.vlgmr.msra.gmra.mxu0 %vm483_vm3, %v463_v7  ;;  %823 = vmatpush1.bf16.msra.mxu1 %v1207_v30  ;;  %v1213_v36 = vld [vmem:[#allocation9 + $0x8] sm:$0xff]   ;;  %v1214_v37 = vld [vmem:[#allocation9] sm:$0xff]   ;;  %v624_v50 = vsub.s32 0, %v623_v49  ;;  %v628_v52 = vsub.s32 1, %v623_v49  ;;  %vm919_vm10 = vcmask 15368  }
  0x78   : > { %1091 = vmatpush3.bf16.msra.mxu0 %v566_v8  ;;  %1096 = vmatprep.mubr.msk.bf16.mxu0 %vm1411_vm0, %v1410_v0  ;;  %v1044_v38 = vld [vmem:[%s1670_s4] ss:$0 sm:$0xff]  ;;  %v1215_v46 = vld [vmem:[#allocation9 + $0x48] sm:$0xff]   ;;  %s1700_s23 = smov (!%p456_p6, %s1494_s23), 1 }
  0x79   : > { %1092 = vmatprep.subr.bf16.mxu0 %v1410_v0  ;;  %824 = vmatprep.subr.bf16.mxu1 %v1412_v29  ;;  %v1216_v47 = vld [vmem:[#allocation9 + $0x40] sm:$0xff]   ;;  %s1039_s28 = sshll.u32 %s1700_s23, 3 }
  0x7a   : > { %v620_v51 = vld [vmem:[%s1672_s6] sm:$0x3]  ;;  %s459_s26 = scalar_lea.vmem %s1677_s11, %s1039_s28 }
  0x7b   : > { %825 = vmatpush1.bf16.msra.mxu1 %v1208_v31  ;;  %v625_v53 = vrot.slane %v620_v51, %v624_v50  ;;  %v629_v54 = vrot.slane %v620_v51, %v628_v52  ;;  %v1060_v1 = vld [vmem:[%s1674_s8] ss:$0 sm:$0xff] }
  0x7c   : > { %1093 = vmatpush3.bf16.msra.mxu0 %v1190_v9  ;;  %826 = vmatprep.subr.bf16.mxu1 %v1412_v29  ;;  %v863_v2 = vld [vmem:[%s1675_s9] sm:$0x3] }
  0x7d   : > { %1094 = vmatprep.subr.bf16.mxu0 %v1410_v0  ;;  %v867_v5 = vrot.slane %v863_v2, %v624_v50  ;;  %v883_v8 = vrot.slane %v863_v2, %v628_v52 }
  0x7f   : > { %827 = vmatpush1.bf16.msra.mxu1 %v1209_v32 }
  0x80   : > { %1095 = vmatpush3.bf16.msra.mxu0 %v1191_v10  ;;  %828 = vmatprep.subr.bf16.mxu1 %v1412_v29 }
  0x81   : > { %692 = vmatprep.subr.bf16.mxu0 %v1194_v11 }
  0x83   : > { %829 = vmatpush1.bf16.msra.mxu1 %v1210_v33 }
  0x84   : > { %830 = vmatprep.subr.bf16.mxu1 %v1412_v29 }
  0x87   : > { %831 = vmatpush1.bf16.msra.mxu1 %v1211_v34 }
  0x88   : > { %832 = vmatprep.subr.bf16.mxu1 %v1412_v29 }
  0x8b   : > { %833 = vmatpush1.bf16.msra.mxu1 %v1212_v35 }
  0x8c   : > { %834 = vmatprep.subr.bf16.mxu1 %v1412_v29 }
  0x8f   : > { %835 = vmatpush1.bf16.msra.mxu1 %v1213_v36 }
  0x90   : > { %836 = vmatprep.subr.bf16.mxu1 %v1412_v29 }
  0x93   : > { %837 = vmatpush1.bf16.msra.mxu1 %v1214_v37 }
  0x94   : > { %850 = vmatprep.subr.bf16.mxu1 %v1412_v29 }
  0x97   : > { %851 = vmatpush2.bf16.msra.mxu1 %v1215_v46 }
  0x98   : > { %852 = vmatprep.subr.bf16.mxu1 %v1412_v29 }
  0x9b   : > { %853 = vmatpush2.bf16.msra.mxu1 %v1216_v47 }
 0x137   : > { %v525_v13 = vpop.f32.mrf.mxu0 }
 0x138   : > { %v526_v14 = vadd.f32 %v1040_v12, %v525_v13 }
 0x139   : > { %v1088_v15 = vpop.f32.mrf.mxu0 }
 0x13a   : > { %v531_v16 = vmax.f32 %v526_v14, 0.0  ;;  %v1072_v15 = vld [vmem:[%s1676_s10] ss:$0 sm:$0xff] }
 0x13b   : > { %v528_v17 = vpop.f32.mrf.mxu0 }
 0x13c   : > { %v532_v19 = vpack.c.bf16 %v531_v16, %v531_v16 }
 0x13d   : > { %v1089_v21 = vpop.f32.mrf.mxu0 }
 0x13e   : > { %1097 = vmatmul.mubr.msk.bf16.vlgmr.msra.gmra.mxu0 %vm560_vm4, %v532_v19 }
 0x13f   : > { %693 = vmatpush1.bf16.msra.mxu0 %v1192_v18  ;;  %718 = vmatprep.mubr.bf16.mxu0 %v1412_v29 }
 0x140   : > { %694 = vmatprep.subr.bf16.mxu0 %v1197_v20 }
 0x143   : > { %695 = vmatpush1.bf16.msra.mxu0 %v1195_v22 }
 0x144   : > { %696 = vmatprep.subr.bf16.mxu0 %v1200_v23 }
 0x147   : > { %697 = vmatpush1.bf16.msra.mxu0 %v1198_v24 }
 0x148   : > { %698 = vmatprep.subr.bf16.mxu0 %v1203_v25 }
 0x14b   : > { %699 = vmatpush1.bf16.msra.mxu0 %v1201_v26 }
 0x14c   : > { %700 = vmatprep.subr.bf16.mxu0 %v1206_v27 }
 0x14f   : > { %701 = vmatpush1.bf16.msra.mxu0 %v1204_v28 }
 0x1fe   : > { %v602_v39 = vpop.f32.mrf.mxu0 }
 0x1ff   : > { %v603_v40 = vadd.f32 %v1044_v38, %v602_v39 }
 0x200   : > { %v1098_v41 = vpop.f32.mrf.mxu0 }
 0x201   : > { %v608_v42 = vmax.f32 %v603_v40, 0.0 }
 0x202   : > { %v605_v43 = vpop.f32.mrf.mxu0 }
 0x203   : > { %v609_v44 = vpack.c.bf16 %v608_v42, %v608_v42 }
 0x204   : > { %v1099_v45 = vpop.f32.mrf.mxu0 }
 0x205   : > { %1059 = vmatmul.mubr.msk.bf16.vlgmr.msra.gmra.mxu0 %vm682_vm5, %v609_v44 }
 0x2c5   : > { %v720_v55 = vpop.f32.mrf.mxu0 }
 0x2c6   : > { %v721_v56 = vadd.f32 %v720_v55, %v625_v53 }
 0x2c7   : > { %v722_v57 = vpop.f32.mrf.mxu0 }
 0x2c8   : > { %v723_v58 = vadd.f32 %v722_v57, %v629_v54  ;;  %v727_v59 = vmax.f32 %v721_v56, 0.0 }
 0x2c9   : > { %v724_v60 = vpop.f32.mrf.mxu0 }
 0x2ca   : > { %v728_v61 = vmax.f32 %v723_v58, 0.0  ;;  %v729_v0 = vpack.c.bf16 %v727_v59, %v727_v59 }
 0x2cb   : > { %v725_v62 = vpop.f32.mrf.mxu0 }
 0x2cc   : > { %v730_v63 = vpack.c.bf16 %v728_v61, %v728_v61 }
 0x2ce   : > { %1071 = vmatprep.mubr.msk.bf16.mxu1 %vm818_vm6, %v730_v63 }
 0x2cf   : > { %855 = vmatmul.mubr.bf16.vlgmr.msra.gmra.mxu1 %v729_v0 }
 0x38f   : > { %v856_v3 = vpop.f32.mrf.mxu1 }
 0x390   : > { %v857_v4 = vadd.f32 %v1060_v1, %v856_v3 }
 0x391   : > { %v858_v6 = vpop.f32.mrf.mxu1 }
 0x392   : > { %v862_v7 = vmax.f32 %v857_v4, 0.0 }
 0x393   : > { %v859_v9 = vpop.f32.mrf.mxu1 }
 0x394   : > { %v868_v10 = vmul.f32 %v867_v5, %v862_v7  ;;  %v884_v13 = vmul.f32 %v883_v8, %v862_v7 }
 0x395   : > { %v860_v11 = vpop.f32.mrf.mxu1 }
 0x396   : > { %v869_v12 = vsel %vm682_vm5, %v868_v10, 0.0  ;;  %v885_v14 = vsel %vm682_vm5, %v884_v13, 0.0 }
 0x397   : > { %870 = vadd.xlane.f32.xlu0 %v869_v12 }
 0x39b   : > { %886 = vadd.xlane.f32.xlu0 %v885_v14 }
 0x420   : > { %v871_v16 = vpop.xlane.xlu0 %870 }
 0x421   : > { %v879_v17 = vadd.f32 %v1072_v15, %v871_v16 }
 0x423   : > { %v890_v18 = vmin.f32 %v879_v17, 20.0  ;;  %vm889_vm9 = vcmp.gt.f32.partialorder %v879_v17, 20.0 }
 0x424   : > { %v887_v19 = vpop.xlane.xlu0 %886 }
 0x425   : > { %v891_v20 = vmul.f32 1.442695, %v890_v18  ;;  %v888_v21 = vadd.f32 %v1072_v15, %v887_v19 }
 0x427   : > { %1217 = vpow2.f32 %v891_v20  ;;  %v906_v22 = vmin.f32 %v888_v21, 20.0  ;;  %vm905_vm12 = vcmp.gt.f32.partialorder %v888_v21, 20.0 }
 0x429   : > { %v907_v23 = vmul.f32 1.442695, %v906_v22 }
 0x42b   : > { %1219 = vpow2.f32 %v907_v23 }
 0x434   : > { %v1218_v24 = vpop.eup %1217 }
 0x435   : > { %v893_v25 = vadd.f32 1.0, %v1218_v24  ;;  %v896_v28 = vmul.f32 -0.5, %v1218_v24  ;;  %v899_v31 = vand.u32 2147483647, %v1218_v24 }
 0x437   : > { %1221 = vlog2.f32 %v893_v25  ;;  %v897_v29 = vadd.f32 1.0, %v896_v28  ;;  %vm900_vm8 = vcmp.lt.f32.partialorder %v899_v31, 0.0004427343 }
 0x438   : > { %v1220_v26 = vpop.eup %1219 }
 0x439   : > { %v909_v27 = vadd.f32 1.0, %v1220_v26  ;;  %v912_v30 = vmul.f32 -0.5, %v1220_v26  ;;  %v898_v34 = vmul.f32 %v1218_v24, %v897_v29  ;;  %v915_v36 = vand.u32 2147483647, %v1220_v26 }
 0x43b   : > { %1223 = vlog2.f32 %v909_v27  ;;  %v913_v35 = vadd.f32 1.0, %v912_v30  ;;  %vm916_vm11 = vcmp.lt.f32.partialorder %v915_v36, 0.0004427343 }
 0x43d   : > { %v914_v41 = vmul.f32 %v1220_v26, %v913_v35 }
 0x444   : > { %v1222_v32 = vpop.eup %1221 }
 0x445   : > { %v895_v33 = vmul.f32 0.6931472, %v1222_v32 }
 0x447   : > { %v901_v37 = vsel %vm900_vm8, %v898_v34, %v895_v33 }
 0x448   : > { %v1224_v38 = vpop.eup %1223  ;;  %v902_v39 = vsel %vm889_vm9, %v879_v17, %v901_v37 }
 0x449   : > { %904 = vst.msk [vmem:[%s459_s26] sm:$0xff] %vm903_vm7, %v902_v39  ;;  %v911_v40 = vmul.f32 0.6931472, %v1224_v38 }
 0x44b   : > { %v917_v42 = vsel %vm916_vm11, %v914_v41, %v911_v40 }
 0x44c   : > { %v918_v43 = vsel %vm905_vm12, %v888_v21, %v917_v42 }
 0x44d   : > { %920 = vst.msk [vmem:[%s459_s26] sm:$0xff] %vm919_vm10, %v918_v43 }
 0x44e PF: > { %p23_p2 = scmp.ge.s32.totalorder %s1565_s27, 4   ;;  %s1695_s17 = smov %s1391_s18 }
 0x44f   : > { %s1696_s18 = smov %s1395_s19  ;;  %s1697_s19 = smov %s1577_s30 }
 0x450   : > { %s1698_s20 = smov %s1565_s27  ;;  %25 = sbr.rel (!%p23_p2) target bundleno = 8 (0x8), region = 120 }
 0x455   :  { %940 = vsyncpa [#allocation3], 1 }
 0x456   :  { %942 = vsyncpa [#allocation3 + $0x1], 1 }
 0x457   :  { %943 = vsyncpa [#allocation5], 1 }
 0x458   :  { %944 = vsyncpa [#allocation8], 1 }

</bundles_post_ra>
